<compile_context>
chip_gen: v6e
topology: v6e:2x2x1
jax: 0.10.0
libtpu: 0.0.40
codegen_flags: <defaults>
</compile_context>

<pallas_src>
import jax
import jax.numpy as jnp
from jax.experimental import pallas as pl
from jax.experimental.pallas import tpu as pltpu


def attention_kernel(x_ref, w_ref, ctx_ref, attw_ref):
    # x_ref:    (TB, T, D)  VMEM -- block of batch rows of lstm_output (native dtype)
    # w_ref:    (1, D)      VMEM -- Linear weight (out_features=1, in_features=D)
    # ctx_ref:  (TB, D)     VMEM -- context vectors
    # attw_ref: (TB, T)     VMEM -- attention weights (unsqueezed in the wrapper)
    x = x_ref[...].astype(jnp.float32)                   # upcast after the (cheap) DMA
    w = w_ref[...].astype(jnp.float32)                   # (1, D)

    # scores[b, t] = sum_d x[b, t, d] * w[0, d]
    # VPU multiply + lane reduce over D; bias omitted (softmax is shift-invariant).
    scores = jnp.sum(x * w[None, :, :], axis=-1)         # (TB, T)

    # Numerically stable softmax over the sequence axis, exact normalisation.
    m = jnp.max(scores, axis=-1, keepdims=True)          # (TB, 1)
    e = jnp.exp(scores - m)                              # (TB, T)
    aw = e / jnp.sum(e, axis=-1, keepdims=True)          # (TB, T)

    attw_ref[...] = aw.astype(attw_ref.dtype)

    # context[b, d] = sum_t x[b, t, d] * aw[b, t]  -- one sublane reduce over T.
    ctx = jnp.sum(x * aw[:, :, None], axis=1)            # (TB, D)
    ctx_ref[...] = ctx.astype(ctx_ref.dtype)


def _round_up(n, m):
    return ((n + m - 1) // m) * m


def _vmem_limit_bytes():
    """Per-generation scoped-VMEM limit: half of physical VMEM
    (v7x: 32 MiB, v5e/v6e: 64 MiB), leaving headroom for compiler scratch."""
    cap = 128 << 20
    try:
        info = pltpu.get_tpu_info()
        cap = int(getattr(info, "vmem_capacity_bytes", cap))
    except Exception:
        pass
    return min(cap // 2, 64 << 20)


def _choose_block_b(B, T, D, itemsize, vmem_limit_bytes):
    """Batch-block size: big enough to amortize per-step overhead, small enough
    that the real per-step footprint fits the scoped VMEM budget, and capped so
    large batches still give several grid steps (megacore + pipelining)."""
    if B <= 8:
        return B                                  # single full block, no padding
    budget = (vmem_limit_bytes * 3) // 4          # headroom for scratch/temps
    per_row = (2 * T * D * itemsize               # double-buffered input tile
               + 2 * T * D * 4                    # in-kernel f32 temporaries
               + 2 * (D + T) * 4)                 # double-buffered output blocks
    tb = max(8, budget // max(per_row, 1))
    tb = min(tb, 1024)
    # Keep the grid >= ~8 steps when the batch allows (v7x second TensorCore,
    # DMA/compute overlap on all generations).
    tb = min(tb, max(8, _round_up(pl.cdiv(B, 8), 8)))
    tb = max(8, (tb // 8) * 8)                    # sublane-aligned multiple of 8
    if tb >= B:
        return B
    return tb


def attention_forward(lstm_output, weight, bias=None, block_b=None):
    """lstm_output: (B, T, D), weight: (1, D) or (D,), bias: (1,) (mathematically
    a no-op for both outputs: softmax over dim=1 is invariant to a scalar shift)."""
    del bias
    B, T, D = lstm_output.shape
    weight = jnp.asarray(weight).reshape(1, D)

    vmem_limit = _vmem_limit_bytes()
    TB = block_b if block_b is not None else _choose_block_b(
        B, T, D, lstm_output.dtype.itemsize, vmem_limit)
    grid = (pl.cdiv(B, TB),)                      # ragged tail handled by Pallas

    ctx, attw = pl.pallas_call(
        attention_kernel,
        out_shape=(
            jax.ShapeDtypeStruct((B, D), lstm_output.dtype),
            jax.ShapeDtypeStruct((B, T), lstm_output.dtype),
        ),
        grid=grid,
        in_specs=[
            pl.BlockSpec((TB, T, D), lambda i: (i, 0, 0)),
            pl.BlockSpec((1, D), lambda i: (0, 0)),
        ],
        out_specs=(
            pl.BlockSpec((TB, D), lambda i: (i, 0)),
            pl.BlockSpec((TB, T), lambda i: (i, 0)),
        ),
        compiler_params=pltpu.CompilerParams(
            dimension_semantics=("parallel",),
            vmem_limit_bytes=vmem_limit,
        ),
    )(lstm_output, weight)

    return ctx, attw[..., None]                   # (B, D), (B, T, 1)


def attention_ref(lstm_output, weight, bias):
    """Pure-JAX reference matching the PyTorch forward exactly (bias included)."""
    x = lstm_output.astype(jnp.float32)
    scores = jnp.einsum("btd,od->bto", x, weight.astype(jnp.float32))[..., 0] + bias[0]
    aw = jax.nn.softmax(scores, axis=1)[..., None]
    ctx = jnp.sum(x * aw, axis=1)
    return ctx, aw


if __name__ == "__main__":
    # Small shapes consistent with the module: B=2, T=8, hidden_dim=16 -> D=32.
    B, T, hidden_dim = 2, 8, 16
    D = 2 * hidden_dim

    key = jax.random.PRNGKey(0)
    k_x, k_w, k_b = jax.random.split(key, 3)

    bound = 1.0 / jnp.sqrt(jnp.float32(D))
    weight = jax.random.uniform(k_w, (1, D), jnp.float32, -bound, bound)
    bias = jax.random.uniform(k_b, (1,), jnp.float32, -bound, bound)
    lstm_output = jax.random.normal(k_x, (B, T, D), jnp.float32)

    # 1) f32 path, full-batch single block.
    ctx, attw = attention_forward(lstm_output, weight, bias)
    jax.block_until_ready((ctx, attw))
    ctx_r, attw_r = attention_ref(lstm_output, weight, bias)
    assert ctx.shape == (B, D) and attw.shape == (B, T, 1)
    assert jnp.allclose(ctx, ctx_r, atol=1e-4, rtol=1e-4)
    assert jnp.allclose(attw, attw_r, atol=1e-4, rtol=1e-4)

    # 2) Ragged-batch path (no wrapper padding copy): B=12, TB=8 -> grid of 2,
    #    the last block is masked by Pallas.
    B2 = 12
    x2 = jax.random.normal(jax.random.PRNGKey(1), (B2, T, D), jnp.float32)
    ctx2, attw2 = attention_forward(x2, weight, bias, block_b=8)
    jax.block_until_ready((ctx2, attw2))
    ctx2_r, attw2_r = attention_ref(x2, weight, bias)
    assert jnp.allclose(ctx2, ctx2_r, atol=1e-4, rtol=1e-4)
    assert jnp.allclose(attw2, attw2_r, atol=1e-4, rtol=1e-4)

    # 3) Native-dtype path: bf16 stays bf16 in HBM (half the DMA bytes),
    #    upcast to f32 only inside the kernel.
    xb = lstm_output.astype(jnp.bfloat16)
    ctx3, attw3 = attention_forward(xb, weight.astype(jnp.bfloat16), bias)
    jax.block_until_ready((ctx3, attw3))
    assert ctx3.dtype == jnp.bfloat16 and attw3.dtype == jnp.bfloat16
    assert jnp.allclose(ctx3.astype(jnp.float32), ctx_r, atol=7e-2, rtol=7e-2)
    assert jnp.allclose(attw3.astype(jnp.float32), attw_r, atol=7e-2, rtol=7e-2)

    print("KERNEL_OK")
</pallas_src>

<mosaic_0001>
module attributes {stable_mosaic.version = 11 : i64} {
  func.func @attention_kernel(%arg0: i32, %arg1: memref<2x8x32xf32, #tpu.memory_space<vmem>>, %arg2: memref<1x32xf32, #tpu.memory_space<vmem>>, %arg3: memref<2x32xf32, #tpu.memory_space<vmem>>, %arg4: memref<2x8xf32, #tpu.memory_space<vmem>>) attributes {dimension_semantics = [#tpu.dimension_semantics<parallel>], iteration_bounds = array<i64: 1>, scalar_prefetch = 0 : i64, scratch_operands = 0 : i64, tpu.core_type = #tpu.core_type<tc>, window_params = [{transform_indices = @transform_0, window_bounds = array<i64: 2, 8, 32>}, {pipeline_mode = #tpu.pipeline_mode<synchronous>, transform_indices = @transform_1, window_bounds = array<i64: 1, 32>}, {transform_indices = @transform_2, window_bounds = array<i64: 2, 32>}, {transform_indices = @transform_3, window_bounds = array<i64: 2, 8>}]} {
    %c0 = arith.constant 0 : index
    %c0_0 = arith.constant 0 : index
    %c0_1 = arith.constant 0 : index
    %0 = vector.load %arg1[%c0, %c0_0, %c0_1] : memref<2x8x32xf32, #tpu.memory_space<vmem>>, vector<2x8x32xf32>
    %c0_2 = arith.constant 0 : index
    %c0_3 = arith.constant 0 : index
    %1 = vector.load %arg2[%c0_2, %c0_3] : memref<1x32xf32, #tpu.memory_space<vmem>>, vector<1x32xf32>
    %2 = vector.shape_cast %1 : vector<1x32xf32> to vector<1x1x32xf32>
    %3 = vector.broadcast %2 : vector<1x1x32xf32> to vector<2x8x32xf32>
    %4 = arith.mulf %0, %3 : vector<2x8x32xf32>
    %cst = arith.constant dense<0.000000e+00> : vector<2x8xf32>
    %5 = vector.multi_reduction <add>, %4, %cst [2] : vector<2x8x32xf32> to vector<2x8xf32>
    %cst_4 = arith.constant dense<0xFF800000> : vector<2xf32>
    %6 = vector.multi_reduction <maximumf>, %5, %cst_4 [1] : vector<2x8xf32> to vector<2xf32>
    %7 = vector.shape_cast %6 : vector<2xf32> to vector<2x1xf32>
    %8 = vector.broadcast %7 : vector<2x1xf32> to vector<2x8xf32>
    %9 = arith.subf %5, %8 : vector<2x8xf32>
    %10 = math.exp %9 : vector<2x8xf32>
    %cst_5 = arith.constant dense<0.000000e+00> : vector<2xf32>
    %11 = vector.multi_reduction <add>, %10, %cst_5 [1] : vector<2x8xf32> to vector<2xf32>
    %12 = vector.shape_cast %11 : vector<2xf32> to vector<2x1xf32>
    %13 = vector.broadcast %12 : vector<2x1xf32> to vector<2x8xf32>
    %14 = arith.divf %10, %13 : vector<2x8xf32>
    %c0_6 = arith.constant 0 : index
    %c0_7 = arith.constant 0 : index
    %15 = vector.load %arg4[%c0_6, %c0_7] : memref<2x8xf32, #tpu.memory_space<vmem>>, vector<2x8xf32>
    tpu.vector_store %arg4[%c0_6, %c0_7], %14 {strides = array<i32>} : memref<2x8xf32, #tpu.memory_space<vmem>>, vector<2x8xf32>,
    %16 = vector.shape_cast %14 : vector<2x8xf32> to vector<2x8x1xf32>
    %17 = vector.broadcast %16 : vector<2x8x1xf32> to vector<2x8x32xf32>
    %18 = arith.mulf %0, %17 : vector<2x8x32xf32>
    %cst_8 = arith.constant dense<0.000000e+00> : vector<2x32xf32>
    %19 = vector.multi_reduction <add>, %18, %cst_8 [1] : vector<2x8x32xf32> to vector<2x32xf32>
    %c0_9 = arith.constant 0 : index
    %c0_10 = arith.constant 0 : index
    %20 = vector.load %arg3[%c0_9, %c0_10] : memref<2x32xf32, #tpu.memory_space<vmem>>, vector<2x32xf32>
    tpu.vector_store %arg3[%c0_9, %c0_10], %19 {strides = array<i32>} : memref<2x32xf32, #tpu.memory_space<vmem>>, vector<2x32xf32>,
    return
  }
  func.func @transform_0(%arg0: i32) -> (i32, i32, i32) {
    %c0_i32 = arith.constant 0 : i32
    %c0_i32_0 = arith.constant 0 : i32
    %c0_i32_1 = arith.constant 0 : i32
    return %arg0, %c0_i32, %c0_i32_0 : i32, i32, i32
  }
  func.func @transform_1(%arg0: i32) -> (i32, i32) {
    %c0_i32 = arith.constant 0 : i32
    %c0_i32_0 = arith.constant 0 : i32
    %c0_i32_1 = arith.constant 0 : i32
    return %c0_i32, %c0_i32_0 : i32, i32
  }
  func.func @transform_2(%arg0: i32) -> (i32, i32) {
    %c0_i32 = arith.constant 0 : i32
    %c0_i32_0 = arith.constant 0 : i32
    return %arg0, %c0_i32 : i32, i32
  }
  func.func @transform_3(%arg0: i32) -> (i32, i32) {
    %c0_i32 = arith.constant 0 : i32
    %c0_i32_0 = arith.constant 0 : i32
    return %arg0, %c0_i32 : i32, i32
  }
}

</mosaic_0001>

<bundles_post_ra>
// kernel: tpu_custom_call.1
= control target key start
LH: loop header
LB: loop body
LE: loop exit
PB: predicated region body
PF: predicated region fallthrough
CT: control target
= control target key end

     0   :  { %9 = vsyncpa [#allocation3], 0  ;;  %s327_s0 = inlined_call_operand.hbm [shape: f32[2,8,32], index: 0, kind: input, shape index: {}]   ;;  %s328_s1 = inlined_call_operand.vmem [shape: f32[1,32], index: 1, kind: input, shape index: {}]   ;;  %s329_s2 = inlined_call_operand.hbm [shape: f32[2,32], index: 2, kind: output, shape index: {0}]   ;;  %s330_s3 = inlined_call_operand.hbm [shape: f32[2,8], index: 3, kind: output, shape index: {1}]  }
   0x1   :  { %10 = vsyncpa [#allocation4], 0 }
   0x2   :  { %11 = vsyncpa [#allocation7], 0  ;;  %s274_s12 = smov [#allocation2]  }
   0x3   :  { %s17_s13 = sshll.u32 %s274_s12, 4  ;;  %s18_s13 = int_to_ptr.vmem [resolvable:$true] %s17_s13 }
   0x4   :  { %s216_s14 = scalar_lea.vmem %s18_s13, 256  ;;  %p221_p1 = scmp.lt.s32.totalorder %s18_s13, %s18_s13 }
   0x5   :  { %p217_p0 = scmp.ne.s32.totalorder %s18_s13, %s216_s14  ;;  %p222_p2 = scmp.lt.s32.totalorder %s216_s14, %s216_s14 }
   0x7   :  { %p223_p3 = por %p222_p2, %p221_p1 }
   0x9   :  { %p224_p4 = pnand %p223_p3, %p217_p0 }
   0xb   :  { %227 = shalt.err (!%p224_p4)
}
   0xc   :  { %s275_s15 = smov 128   ;;  %s276_s16 = smov 8  }
   0xd   :  { %23 = dma.hbm_to_vmem [thread:$0]  %s327_s0, 256, %s18_s13, [#allocation3], %s275_s15, %s275_s15, %s276_s16  }
   0xe   :  { %268 = dma.done.wait [#allocation3], 256  }
   0xf   :  { %269 = vsyncadd [#allocation3], 4294967040  ;;  %v29_v0 = vld [vmem:[#allocation2] sm:$0xff]  ;;  %vm40_vm0 = vcmask 261120   ;;  %v306_v2 = vld [vmem:[#allocation2 + $0x8] sm:$0xff]  ;;  %v49_v7 = vlaneseq  ;;  %vm59_vm1 = vcmask 1041409  }
  0x10   :  { %v191_v1 = vld [vmem:[%s328_s1] ss:$0 sm:$0xff]  ;;  %vm62_vm2 = vcmask 58368   ;;  %v277_v17 = vmov 0   ;;  %s278_s0 = smov [#allocation6]  }
  0x11   :  { %v38_v3 = vmul.f32 %v191_v1, %v29_v0  ;;  %v39_v4 = vmul.f32 %v191_v1, %v306_v2  ;;  %v50_v8 = vand.u32 127, %v49_v7  ;;  %v52_v9 = vshrl.u32 %v49_v7, 7  ;;  %199 = vset.pattern.permute.xlu0 %v277_v17  ;;  %198 = vset.pattern.permute.xlu1 %v277_v17  ;;  %s178_s1 = sshll.u32 %s278_s0, 4  ;;  %s179_s1 = int_to_ptr.vmem [resolvable:$true] %s178_s1 }
  0x12   :  { %s228_s21 = scalar_lea.vmem %s179_s1, 32  ;;  %p233_p6 = scmp.lt.s32.totalorder %s179_s1, %s179_s1 }
  0x13   :  { %v41_v5 = vsel %vm40_vm0, %v38_v3, 0.0  ;;  %v44_v6 = vsel %vm40_vm0, %v39_v4, 0.0  ;;  %v53_v11 = vsub.s32 %v50_v8, %v52_v9  ;;  %v69_v18 = vsub.s32 0, %v52_v9  ;;  %p229_p5 = scmp.ne.s32.totalorder %s179_s1, %s228_s21  ;;  %p234_p7 = scmp.lt.s32.totalorder %s228_s21, %s228_s21 }
  0x14   :  { %42 = vadd.xlane.f32.xlu0 %v41_v5  ;;  %v73_v19 = vsub.s32 1, %v52_v9 }
  0x15   :  { %p235_p8 = por %p234_p7, %p233_p6 }
  0x17   :  { %p236_p9 = pnand %p235_p8, %p229_p5 }
  0x18   :  { %45 = vadd.xlane.f32.xlu0 %v44_v6 }
  0x9d   :  { %v43_v10 = vpop.xlane.xlu0 %42 }
  0x9e   :  { %v54_v13 = vrot.slane %v43_v10, %v53_v11 }
  0xa1   :  { %v46_v12 = vpop.xlane.xlu0 %45 }
  0xa2   :  { %v58_v14 = vrot.slane %v46_v12, %v53_v11 }
  0xa4   :  { %v60_v15 = vsel %vm59_vm1, %v58_v14, %v54_v13 }
  0xa5   :  { %v63_v16 = vsel %vm62_vm2, %v60_v15, -inf }
  0xa6   :  { %64 = vmax.xlane.f32.xlu1 %v63_v16 }
 0x12f   :  { %v65_v20 = vpop.xlane.xlu1 %64 }
 0x130   :  { %v70_v21 = vrot.slane %v65_v20, %v69_v18  ;;  %v74_v22 = vrot.slane %v65_v20, %v73_v19 }
 0x132   :  { %v77_v23 = vsub.f32 %v43_v10, %v70_v21  ;;  %v78_v24 = vsub.f32 %v46_v12, %v74_v22 }
 0x134   :  { %v79_v25 = vmul.f32 1.442695, %v77_v23  ;;  %v81_v26 = vmul.f32 1.442695, %v78_v24 }
 0x136   :  { %200 = vpow2.f32 %v79_v25 }
 0x137   :  { %202 = vpow2.f32 %v81_v26 }
 0x143   :  { %v201_v27 = vpop.eup %200 }
 0x144   :  { %v203_v28 = vpop.eup %202  ;;  %86 = vperm.xlu1 %198, %v201_v27  }
 0x145   :  { %89 = vperm.xlu0 %199, %v203_v28  }
 0x1bf   :  { %v87_v29 = vpop.permute.xlu1 %86 }
 0x1c0   :  { %v90_v30 = vpop.permute.xlu0 %89  ;;  %v94_v31 = vrot.slane %v87_v29, %v53_v11 }
 0x1c1   :  { %v98_v32 = vrot.slane %v90_v30, %v53_v11 }
 0x1c3   :  { %v99_v33 = vsel %vm59_vm1, %v98_v32, %v94_v31 }
 0x1c4   :  { %v101_v34 = vsel %vm62_vm2, %v99_v33, 0.0 }
 0x1c5   :  { %102 = vadd.xlane.f32.xlu1 %v101_v34 }
 0x24e   :  { %v103_v35 = vpop.xlane.xlu1 %102 }
 0x24f   :  { %v108_v36 = vrot.slane %v103_v35, %v69_v18  ;;  %v112_v37 = vrot.slane %v103_v35, %v73_v19 }
 0x251   :  { %204 = vrcp.f32 %v108_v36 }
 0x252   :  { %206 = vrcp.f32 %v112_v37 }
 0x25e   :  { %v205_v38 = vpop.eup %204 }
 0x25f   :  { %v116_v39 = vmul.f32 %v205_v38, %v201_v27  ;;  %v207_v40 = vpop.eup %206 }
 0x260   :  { %v118_v41 = vmul.f32 %v207_v40, %v203_v28 }
 0x261   :  { %122 = vperm.xlu0 %199, %v116_v39  }
 0x265   :  { %125 = vperm.xlu0 %199, %v118_v41  }
 0x2dc   :  { %v123_v42 = vpop.permute.xlu0 %122 }
 0x2dd   :  { %v140_v43 = vmul.f32 %v123_v42, %v29_v0  ;;  %v130_v47 = vrot.slane %v123_v42, %v53_v11 }
 0x2df   :  { %v142_v44 = vsel %vm40_vm0, %v140_v43, 0.0 }
 0x2e0   :  { %v143_v45 = vrot.slane %v142_v44, 4  ;;  %v126_v46 = vpop.permute.xlu0 %125 }
 0x2e1   :  { %v134_v48 = vrot.slane %v126_v46, %v53_v11  ;;  %v141_v49 = vmul.f32 %v126_v46, %v306_v2 }
 0x2e2   :  { %v144_v50 = vadd.f32 %v143_v45, %v142_v44 }
 0x2e3   :  { %v149_v51 = vsel %vm40_vm0, %v141_v49, 0.0  ;;  %v135_v52 = vsel %vm59_vm1, %v134_v48, %v130_v47 }
 0x2e4   :  { %v145_v53 = vrot.slane %v144_v50, 2  ;;  %v150_v54 = vrot.slane %v149_v51, 4  ;;  %137 = vst.msk [vmem:[#allocation6] sm:$0x3] %vm62_vm2, %v135_v52 }
 0x2e5   :  { %239 = shalt.err (!%p236_p9)
}
 0x2e6   :  { %181 = dma.vmem_to_hbm [thread:$0]  %s179_s1, 32, %s330_s3, [#allocation7]   ;;  %v146_v55 = vadd.f32 %v145_v53, %v144_v50  ;;  %v151_v56 = vadd.f32 %v150_v54, %v149_v51  ;;  %vm160_vm3 = vcmask 254976  }
 0x2e7   :  { %s279_s24 = smov [#allocation5]  }
 0x2e8   :  { %v152_v57 = vrot.slane %v151_v56, 2  ;;  %v147_v58 = vrot.slane %v146_v55, 1  ;;  %s168_s25 = sshll.u32 %s279_s24, 4  ;;  %s169_s25 = int_to_ptr.vmem [resolvable:$true] %s168_s25 }
 0x2e9   :  { %s248_s26 = scalar_lea.vmem %s169_s25, 32  ;;  %p253_p11 = scmp.lt.s32.totalorder %s169_s25, %s169_s25 }
 0x2ea   :  { %v153_v59 = vadd.f32 %v152_v57, %v151_v56  ;;  %v148_v62 = vadd.f32 %v147_v58, %v146_v55  ;;  %p249_p10 = scmp.ne.s32.totalorder %s169_s25, %s248_s26  ;;  %p254_p12 = scmp.lt.s32.totalorder %s248_s26, %s248_s26 }
 0x2ec   :  { %v154_v60 = vrot.slane %v153_v59, 1  ;;  %p255_p13 = por %p254_p12, %p253_p11 }
 0x2ee   :  { %v155_v61 = vadd.f32 %v154_v60, %v153_v59  ;;  %p256_p0 = pnand %p255_p13, %p249_p10 }
 0x2f0   :  { %v158_v63 = vsel %vm59_vm1, %v155_v61, %v148_v62 }
 0x2f1   :  { %161 = vst.msk [vmem:[#allocation5] sm:$0x3] %vm160_vm3, %v158_v63 }
 0x2f2   :  { %259 = shalt.err (!%p256_p0)
}
 0x2f3   :  { %171 = dma.vmem_to_hbm [thread:$0]  %s169_s25, 32, %s329_s2, [#allocation4]  }
 0x2f4   :  { %270 = dma.done.wait [#allocation4], 32  }
 0x2f5   :  { %271 = vsyncadd [#allocation4], 4294967264 }
 0x2f6   :  { %272 = dma.done.wait [#allocation7], 32  }
 0x2f7   :  { %273 = vsyncadd [#allocation7], 4294967264 }
 0x2f8   :  { %188 = vsyncpa [#allocation3], 1 }
 0x2f9   :  { %189 = vsyncpa [#allocation4], 1 }
 0x2fa   :  { %190 = vsyncpa [#allocation7], 1 }

</bundles_post_ra>
